<compile_context>
chip_gen: v6e
topology: v6e:2x2x1
jax: 0.10.0
libtpu: 0.0.40
codegen_flags: <defaults>
</compile_context>

<pallas_src>
import math

import jax
import jax.numpy as jnp
from jax.experimental import pallas as pl
from jax.experimental.pallas import tpu as pltpu


# ----------------------------------------------------------------------------
# Hardware query
# ----------------------------------------------------------------------------
def _tensorcores_per_chip():
    """2 TensorCores per chip on v7x, 1 on v5e/v6e. Conservative default: 1."""
    try:
        kind = jax.devices()[0].device_kind.lower()
    except Exception:
        return 1
    return 2 if "v7" in kind else 1


# ----------------------------------------------------------------------------
# DMA (HBM->HBM) path
# ----------------------------------------------------------------------------
def _build_dma_plans(col_widths, col_offsets, byte_widths, outer, num_shards):
    """Per-shard list of (sem_idx, src_idx, row0, nrows, col0, width) copies.

    Copies within each shard are issued largest-first so the kernel tail is
    never set by a big transfer that was queued last.
    """
    n = len(col_widths)
    order = sorted(range(n), key=lambda i: -byte_widths[i])

    def entries(indices, row0, nrows, sem_start):
        plan, sem = [], sem_start
        for i in indices:
            plan.append((sem, i, row0, nrows, col_offsets[i], col_widths[i]))
            sem += 1
        return plan, sem

    if num_shards <= 1:
        plan, _ = entries(order, 0, outer, 0)
        return [plan]

    # Two shards (v7x): split by rows when the row dim splits evenly.
    if outer >= 2 and outer % 2 == 0:
        half = outer // 2
        plans, sem = [], 0
        for s in range(2):
            plan, sem = entries(order, s * half, half, sem)
            plans.append(plan)
        return plans

    # outer == 1 or odd: split by inputs, greedily balancing bytes.
    assign, load = [[], []], [0, 0]
    for i in order:
        s = 0 if load[0] <= load[1] else 1
        assign[s].append(i)
        load[s] += byte_widths[i]
    plans, sem = [], 0
    for s in range(2):
        if not assign[s]:
            continue
        plan, sem = entries(assign[s], 0, outer, sem)
        plans.append(plan)
    return plans


def _make_dma_concat_kernel(plans, num_inputs):
    """Kernel: overlapped HBM->HBM strided DMAs per the per-shard plan."""

    def run_plan(in_refs, out_ref, sem, plan):
        copies = []
        for (sem_i, src_i, r0, rn, c0, w) in plan:
            cp = pltpu.make_async_copy(
                in_refs[src_i].at[r0:r0 + rn, :],
                out_ref.at[r0:r0 + rn, c0:c0 + w],
                sem.at[sem_i],
            )
            cp.start()            # all DMAs in flight / overlapped
            copies.append(cp)
        for cp in copies:         # drain
            cp.wait()

    def kernel(*refs):
        in_refs = refs[:num_inputs]
        out_ref = refs[num_inputs]
        sem = refs[num_inputs + 1]
        if len(plans) == 1:
            run_plan(in_refs, out_ref, sem, plans[0])
        else:
            shard = pl.program_id(0)
            for s, plan in enumerate(plans):
                pl.when(shard == s)(
                    lambda plan=plan: run_plan(in_refs, out_ref, sem, plan))

    return kernel


# ----------------------------------------------------------------------------
# VMEM-tiled path (narrow column slices / fused dtype cast)
# ----------------------------------------------------------------------------
def _make_vmem_concat_kernel(col_widths, col_offsets, out_dtype):
    num_inputs = len(col_widths)

    def kernel(*refs):
        in_refs = refs[:num_inputs]
        out_ref = refs[num_inputs]
        for src, c0, w in zip(in_refs, col_offsets, col_widths):
            # Cast (if needed) fused on the VPU; output block is written back
            # to HBM as one dense, lane-aligned (tm, total_cols) slab.
            out_ref[:, c0:c0 + w] = src[...].astype(out_dtype)

    return kernel


# ----------------------------------------------------------------------------
# Public wrapper
# ----------------------------------------------------------------------------
def pallas_concat(args, axis):
    """JAX/Pallas equivalent of torch.cat(args, axis)."""
    assert len(args) >= 1
    ndim = args[0].ndim
    axis = axis % ndim  # normalize negative axis like torch.cat

    # TODO(synk): jnp.result_type may differ from torch.cat promotion in rare
    # mixed int/float/bool edge cases; pin explicitly if exact parity needed.
    out_dtype = jnp.result_type(*[a.dtype for a in args])

    sizes = [a.shape[axis] for a in args]
    out_shape = list(args[0].shape)
    out_shape[axis] = sum(sizes)
    out_shape = tuple(out_shape)

    # Degenerate / empty output: nothing for a kernel to do.
    if math.prod(out_shape) == 0:
        return jnp.zeros(out_shape, out_dtype)

    outer = math.prod(args[0].shape[:axis])
    inner = math.prod(args[0].shape[axis + 1:])

    # Keep only inputs that contribute bytes.
    kept = [(a, s * inner) for a, s in zip(args, sizes) if s * inner > 0]

    # Exactly one contributor: return it directly (no extra HBM pass / launch).
    if len(kept) == 1:
        a, _ = kept[0]
        return a.astype(out_dtype).reshape(out_shape)

    flat_args = [a.reshape(outer, w) for a, w in kept]
    col_widths = [w for _, w in kept]
    col_offsets, off = [], 0
    for w in col_widths:
        col_offsets.append(off)
        off += w
    total_cols = off

    in_byte_widths = [w * a.dtype.itemsize for a, w in kept]
    out_itemsize = jnp.dtype(out_dtype).itemsize
    mixed_dtype = any(a.dtype != out_dtype for a, _ in kept)

    # ---- path selection -----------------------------------------------------
    # Narrow / unaligned per-row chunks waste HBM write transactions on the
    # pure-DMA path; mixed dtypes want the cast fused in-kernel.
    narrow = any(bw < 512 or (w % 128) != 0
                 for w, bw in zip(col_widths, in_byte_widths))
    row_bytes = sum(in_byte_widths) + total_cols * out_itemsize
    VMEM_TILE_BUDGET = 6 * 1024 * 1024  # single-buffered; x2 pipeline ~12 MiB
    tm_budget = VMEM_TILE_BUDGET // max(row_bytes, 1)
    if tm_budget >= outer:
        tm = outer
    elif tm_budget >= 8:
        tm = (tm_budget // 8) * 8   # (8,128) rule: row-tile multiple of 8
    else:
        tm = 0                      # rows too wide for VMEM tiling -> DMA path

    use_vmem = (narrow or mixed_dtype) and tm > 0

    if use_vmem:
        kernel = _make_vmem_concat_kernel(col_widths, col_offsets, out_dtype)
        out2d = pl.pallas_call(
            kernel,
            out_shape=jax.ShapeDtypeStruct((outer, total_cols), out_dtype),
            grid=(pl.cdiv(outer, tm),),
            in_specs=[pl.BlockSpec((tm, w), lambda i: (i, 0))
                      for w in col_widths],
            out_specs=pl.BlockSpec((tm, total_cols), lambda i: (i, 0)),
            compiler_params=pltpu.CompilerParams(
                dimension_semantics=("arbitrary",)),
        )(*flat_args)
        return out2d.reshape(out_shape)

    # ---- DMA (HBM->HBM) path ------------------------------------------------
    if mixed_dtype:
        # DMAs cannot cast; pre-cast only the mismatched inputs.
        flat_args = [a if a.dtype == out_dtype else a.astype(out_dtype)
                     for a in flat_args]
        in_byte_widths = [w * out_itemsize for w in col_widths]

    num_shards = 2 if _tensorcores_per_chip() >= 2 else 1
    plans = _build_dma_plans(col_widths, col_offsets, in_byte_widths,
                             outer, num_shards)
    num_shards = len(plans)
    total_copies = sum(len(p) for p in plans)

    kernel = _make_dma_concat_kernel(plans, len(flat_args))
    dims = (pltpu.CORE_PARALLEL,) if num_shards > 1 else ("arbitrary",)

    out2d = pl.pallas_call(
        kernel,
        out_shape=jax.ShapeDtypeStruct((outer, total_cols), out_dtype),
        grid=(num_shards,),
        in_specs=[pl.BlockSpec(memory_space=pl.ANY) for _ in flat_args],
        out_specs=pl.BlockSpec(memory_space=pl.ANY),
        scratch_shapes=[pltpu.SemaphoreType.DMA((total_copies,))],
        compiler_params=pltpu.CompilerParams(dimension_semantics=dims),
    )(*flat_args)
    return out2d.reshape(out_shape)


class ConcatModule:
    """Mirror of TorchConcat(axis): forward(*args) -> concat along axis."""

    def __init__(self, axis):
        self.axis = axis

    def __call__(self, *args):
        return pallas_concat(args, self.axis)


if __name__ == "__main__":
    key = jax.random.PRNGKey(0)
    k1, k2, k3 = jax.random.split(key, 3)

    # 1) NCHW channel concat (axis=1): wide, lane-aligned chunks -> DMA path.
    x1 = jax.random.normal(k1, (2, 4, 16, 16), dtype=jnp.float32)
    x2 = jax.random.normal(k2, (2, 6, 16, 16), dtype=jnp.float32)
    x3 = jax.random.normal(k3, (2, 2, 16, 16), dtype=jnp.float32)
    out = ConcatModule(axis=1)(x1, x2, x3)
    jax.block_until_ready(out)
    ref = jnp.concatenate([x1, x2, x3], axis=1)
    assert out.shape == (2, 12, 16, 16), out.shape
    assert jnp.array_equal(out, ref), "concat mismatch (axis=1)"

    # 2) Last-axis concat with small D: narrow chunks -> VMEM-tiled path.
    y1 = jax.random.normal(k1, (2, 4, 8, 16), dtype=jnp.float32)
    y2 = jax.random.normal(k2, (2, 4, 8, 16), dtype=jnp.float32)
    out2 = ConcatModule(axis=-1)(y1, y2)
    jax.block_until_ready(out2)
    assert jnp.array_equal(out2, jnp.concatenate([y1, y2], axis=-1)), \
        "concat mismatch (axis=-1)"

    # 3) Leading-axis concat (outer == 1) with mixed dtypes: VMEM path with
    #    the bf16->f32 promotion fused into the kernel.
    z1 = jax.random.normal(k3, (3, 32), dtype=jnp.float32)
    z2 = jax.random.normal(k1, (5, 32), dtype=jnp.bfloat16)
    out3 = ConcatModule(axis=0)(z1, z2)
    jax.block_until_ready(out3)
    assert jnp.array_equal(out3, jnp.concatenate([z1, z2], axis=0)), \
        "concat mismatch (axis=0, mixed dtype)"

    # 4) Single-input degenerate case (early-return path, no kernel launch).
    out4 = ConcatModule(axis=1)(x1)
    jax.block_until_ready(out4)
    assert jnp.array_equal(out4, x1), "concat mismatch (single input)"

    print("KERNEL_OK")
</pallas_src>

<mosaic_0001>
module attributes {stable_mosaic.version = 11 : i64} {
  func.func @kernel(%arg0: i32, %arg1: memref<2x1024xf32, #tpu.memory_space<any>>, %arg2: memref<2x1536xf32, #tpu.memory_space<any>>, %arg3: memref<2x512xf32, #tpu.memory_space<any>>, %arg4: memref<2x3072xf32, #tpu.memory_space<any>>, %arg5: memref<3x!tpu.dma_semaphore, #tpu.memory_space<semaphore_mem>>) attributes {dimension_semantics = [#tpu.dimension_semantics<arbitrary>], iteration_bounds = array<i64: 1>, scalar_prefetch = 0 : i64, scratch_operands = 1 : i64, tpu.core_type = #tpu.core_type<tc>, window_params = [{}, {}, {}, {}]} {
    %c0_i32 = arith.constant 0 : i32
    %c0_i32_0 = arith.constant 0 : i32
    %c0_i32_1 = arith.constant 0 : i32
    %0 = tpu.memref_slice %arg2[%c0_i32_0, %c0_i32_1] : memref<2x1536xf32, #tpu.memory_space<any>> -> memref<2x1536xf32, #tpu.memory_space<any>>
    %c0_i32_2 = arith.constant 0 : i32
    %c1024_i32 = arith.constant 1024 : i32
    %1 = tpu.memref_slice %arg4[%c0_i32_2, %c1024_i32] : memref<2x3072xf32, #tpu.memory_space<any>> -> memref<2x1536xf32, #tpu.memory_space<any>>
    %2 = tpu.memref_slice %arg5[%c0_i32] : memref<3x!tpu.dma_semaphore, #tpu.memory_space<semaphore_mem>> -> memref<1x!tpu.dma_semaphore, #tpu.memory_space<semaphore_mem>>
    %3 = tpu.memref_squeeze %2 : memref<1x!tpu.dma_semaphore, #tpu.memory_space<semaphore_mem>> -> memref<!tpu.dma_semaphore, #tpu.memory_space<semaphore_mem>>
    tpu.enqueue_dma source(%0 : memref<2x1536xf32, #tpu.memory_space<any>>) target(%1 : memref<2x1536xf32, #tpu.memory_space<any>>) target_semaphore(%3 : memref<!tpu.dma_semaphore, #tpu.memory_space<semaphore_mem>>)
    %c1_i32 = arith.constant 1 : i32
    %c0_i32_3 = arith.constant 0 : i32
    %c0_i32_4 = arith.constant 0 : i32
    %4 = tpu.memref_slice %arg1[%c0_i32_3, %c0_i32_4] : memref<2x1024xf32, #tpu.memory_space<any>> -> memref<2x1024xf32, #tpu.memory_space<any>>
    %c0_i32_5 = arith.constant 0 : i32
    %c0_i32_6 = arith.constant 0 : i32
    %5 = tpu.memref_slice %arg4[%c0_i32_5, %c0_i32_6] : memref<2x3072xf32, #tpu.memory_space<any>> -> memref<2x1024xf32, #tpu.memory_space<any>>
    %6 = tpu.memref_slice %arg5[%c1_i32] : memref<3x!tpu.dma_semaphore, #tpu.memory_space<semaphore_mem>> -> memref<1x!tpu.dma_semaphore, #tpu.memory_space<semaphore_mem>>
    %7 = tpu.memref_squeeze %6 : memref<1x!tpu.dma_semaphore, #tpu.memory_space<semaphore_mem>> -> memref<!tpu.dma_semaphore, #tpu.memory_space<semaphore_mem>>
    tpu.enqueue_dma source(%4 : memref<2x1024xf32, #tpu.memory_space<any>>) target(%5 : memref<2x1024xf32, #tpu.memory_space<any>>) target_semaphore(%7 : memref<!tpu.dma_semaphore, #tpu.memory_space<semaphore_mem>>)
    %c2_i32 = arith.constant 2 : i32
    %c0_i32_7 = arith.constant 0 : i32
    %c0_i32_8 = arith.constant 0 : i32
    %8 = tpu.memref_slice %arg3[%c0_i32_7, %c0_i32_8] : memref<2x512xf32, #tpu.memory_space<any>> -> memref<2x512xf32, #tpu.memory_space<any>>
    %c0_i32_9 = arith.constant 0 : i32
    %c2560_i32 = arith.constant 2560 : i32
    %9 = tpu.memref_slice %arg4[%c0_i32_9, %c2560_i32] : memref<2x3072xf32, #tpu.memory_space<any>> -> memref<2x512xf32, #tpu.memory_space<any>>
    %10 = tpu.memref_slice %arg5[%c2_i32] : memref<3x!tpu.dma_semaphore, #tpu.memory_space<semaphore_mem>> -> memref<1x!tpu.dma_semaphore, #tpu.memory_space<semaphore_mem>>
    %11 = tpu.memref_squeeze %10 : memref<1x!tpu.dma_semaphore, #tpu.memory_space<semaphore_mem>> -> memref<!tpu.dma_semaphore, #tpu.memory_space<semaphore_mem>>
    tpu.enqueue_dma source(%8 : memref<2x512xf32, #tpu.memory_space<any>>) target(%9 : memref<2x512xf32, #tpu.memory_space<any>>) target_semaphore(%11 : memref<!tpu.dma_semaphore, #tpu.memory_space<semaphore_mem>>)
    %c0_i32_10 = arith.constant 0 : i32
    %c0_i32_11 = arith.constant 0 : i32
    %c0_i32_12 = arith.constant 0 : i32
    %12 = tpu.memref_slice %arg2[%c0_i32_11, %c0_i32_12] : memref<2x1536xf32, #tpu.memory_space<any>> -> memref<2x1536xf32, #tpu.memory_space<any>>
    %c0_i32_13 = arith.constant 0 : i32
    %c1024_i32_14 = arith.constant 1024 : i32
    %13 = tpu.memref_slice %arg4[%c0_i32_13, %c1024_i32_14] : memref<2x3072xf32, #tpu.memory_space<any>> -> memref<2x1536xf32, #tpu.memory_space<any>>
    %14 = tpu.memref_slice %arg5[%c0_i32_10] : memref<3x!tpu.dma_semaphore, #tpu.memory_space<semaphore_mem>> -> memref<1x!tpu.dma_semaphore, #tpu.memory_space<semaphore_mem>>
    %15 = tpu.memref_squeeze %14 : memref<1x!tpu.dma_semaphore, #tpu.memory_space<semaphore_mem>> -> memref<!tpu.dma_semaphore, #tpu.memory_space<semaphore_mem>>
    tpu.wait_dma2 semaphore(%15 : memref<!tpu.dma_semaphore, #tpu.memory_space<semaphore_mem>>) src(%12 : memref<2x1536xf32, #tpu.memory_space<any>>) dst(%13 : memref<2x1536xf32, #tpu.memory_space<any>>)
    %c1_i32_15 = arith.constant 1 : i32
    %c0_i32_16 = arith.constant 0 : i32
    %c0_i32_17 = arith.constant 0 : i32
    %16 = tpu.memref_slice %arg1[%c0_i32_16, %c0_i32_17] : memref<2x1024xf32, #tpu.memory_space<any>> -> memref<2x1024xf32, #tpu.memory_space<any>>
    %c0_i32_18 = arith.constant 0 : i32
    %c0_i32_19 = arith.constant 0 : i32
    %17 = tpu.memref_slice %arg4[%c0_i32_18, %c0_i32_19] : memref<2x3072xf32, #tpu.memory_space<any>> -> memref<2x1024xf32, #tpu.memory_space<any>>
    %18 = tpu.memref_slice %arg5[%c1_i32_15] : memref<3x!tpu.dma_semaphore, #tpu.memory_space<semaphore_mem>> -> memref<1x!tpu.dma_semaphore, #tpu.memory_space<semaphore_mem>>
    %19 = tpu.memref_squeeze %18 : memref<1x!tpu.dma_semaphore, #tpu.memory_space<semaphore_mem>> -> memref<!tpu.dma_semaphore, #tpu.memory_space<semaphore_mem>>
    tpu.wait_dma2 semaphore(%19 : memref<!tpu.dma_semaphore, #tpu.memory_space<semaphore_mem>>) src(%16 : memref<2x1024xf32, #tpu.memory_space<any>>) dst(%17 : memref<2x1024xf32, #tpu.memory_space<any>>)
    %c2_i32_20 = arith.constant 2 : i32
    %c0_i32_21 = arith.constant 0 : i32
    %c0_i32_22 = arith.constant 0 : i32
    %20 = tpu.memref_slice %arg3[%c0_i32_21, %c0_i32_22] : memref<2x512xf32, #tpu.memory_space<any>> -> memref<2x512xf32, #tpu.memory_space<any>>
    %c0_i32_23 = arith.constant 0 : i32
    %c2560_i32_24 = arith.constant 2560 : i32
    %21 = tpu.memref_slice %arg4[%c0_i32_23, %c2560_i32_24] : memref<2x3072xf32, #tpu.memory_space<any>> -> memref<2x512xf32, #tpu.memory_space<any>>
    %22 = tpu.memref_slice %arg5[%c2_i32_20] : memref<3x!tpu.dma_semaphore, #tpu.memory_space<semaphore_mem>> -> memref<1x!tpu.dma_semaphore, #tpu.memory_space<semaphore_mem>>
    %23 = tpu.memref_squeeze %22 : memref<1x!tpu.dma_semaphore, #tpu.memory_space<semaphore_mem>> -> memref<!tpu.dma_semaphore, #tpu.memory_space<semaphore_mem>>
    tpu.wait_dma2 semaphore(%23 : memref<!tpu.dma_semaphore, #tpu.memory_space<semaphore_mem>>) src(%20 : memref<2x512xf32, #tpu.memory_space<any>>) dst(%21 : memref<2x512xf32, #tpu.memory_space<any>>)
    return
  }
}

</mosaic_0001>

<bundles_post_ra>
// kernel: tpu_custom_call.1
= control target key start
LH: loop header
LB: loop body
LE: loop exit
PB: predicated region body
PF: predicated region fallthrough
CT: control target
= control target key end

     0   :  { %s77_s15 = smov [#allocation2]   ;;  %s78_s16 = smov 131072   ;;  %s120_s1 = inlined_call_operand.hbm [shape: f32[2,1536], index: 1, kind: input, shape index: {}]   ;;  %s121_s3 = inlined_call_operand.hbm [shape: f32[2,3072], index: 3, kind: output, shape index: {}]   ;;  %s122_s0 = inlined_call_operand.hbm [shape: f32[2,1024], index: 0, kind: input, shape index: {}]   ;;  %s123_s2 = inlined_call_operand.hbm [shape: f32[2,512], index: 2, kind: input, shape index: {}]  }
   0x1   :  { %s8_s14 = scalar_lea.hbm %s121_s3, 256  ;;  %s79_s17 = smov 0  }
   0x2   :  { %15 = dma.general %s120_s1, 384, %s8_s14, %s77_s15, %s78_s16, [#allocation4], %s79_s17, 0  }
   0x3   :  { %s24_s22 = scalar_lea.hbm %s121_s3, 640  ;;  %s80_s23 = smov [#allocation2 + $0x1]  }
   0x4   :  { %23 = dma.general %s122_s0, 256, %s121_s3, %s80_s23, %s78_s16, [#allocation6], %s79_s17, 0  }
   0x5   :  { %s81_s28 = smov [#allocation2 + $0x2]  }
   0x6   :  { %32 = dma.general %s123_s2, 128, %s24_s22, %s81_s28, %s78_s16, [#allocation8], %s79_s17, 0  }
   0x7   :  { %71 = dma.done.wait [#allocation2], 384 }
   0x8   :  { %72 = vsyncadd [#allocation2], 4294966912 }
   0x9   :  { %73 = dma.done.wait [#allocation2 + $0x1], 256 }
   0xa   :  { %74 = vsyncadd [#allocation2 + $0x1], 4294967040 }
   0xb   :  { %75 = dma.done.wait [#allocation2 + $0x2], 128 }
   0xc   :  { %76 = vsyncadd [#allocation2 + $0x2], 4294967168 }
   0xd   :  { %43 = vsyncmov [#allocation2] }
  0x10   :  { %s44_s1 = vpop.sfrf %43 }
  0x11   :  { %p63_p0 = scmp.ne.s32.totalorder %s44_s1, 0 }
  0x13   :  { %48 = shalt.err (%p63_p0)  }
  0x14   :  { %50 = vsyncmov [#allocation2 + $0x1] }
  0x17   :  { %s51_s4 = vpop.sfrf %50 }
  0x18   :  { %p64_p1 = scmp.ne.s32.totalorder %s51_s4, 0 }
  0x1a   :  { %55 = shalt.err (%p64_p1)  }
  0x1b   :  { %57 = vsyncmov [#allocation2 + $0x2] }
  0x1e   :  { %s58_s0 = vpop.sfrf %57 }
  0x1f   :  { %p65_p2 = scmp.ne.s32.totalorder %s58_s0, 0 }
  0x21   :  { %62 = shalt.err (%p65_p2)  }

</bundles_post_ra>
